<compile_context>
chip_gen: v7x
topology: tpu7x:2x2x1
jax: 0.10.0
libtpu: 0.0.40
codegen_flags: <defaults>
</compile_context>

<pallas_src>
import jax
import jax.numpy as jnp
from jax.experimental import pallas as pl
from jax.experimental.pallas import tpu as pltpu


def _round_up(x, m):
    return (x + m - 1) // m * m


def _fit_tile(want, dim128):
    """Largest multiple of 128 <= want that divides dim128 (dim128 % 128 == 0)."""
    t = max(128, (min(want, dim128) // 128) * 128)
    while dim128 % t != 0:
        t -= 128
    return t


def _pad(a, target_shape):
    if tuple(a.shape) == tuple(target_shape):
        return a
    return jnp.pad(a, [(0, t - s) for s, t in zip(a.shape, target_shape)])


def _gcn_kernel(adj_ref, x_ref, wt_ref, b_ref, out_ref, support_ref):
    """One grid step of the fused GCN layer.

    adj_ref:     [tm, tk]   adjacency row-tile x node-tile       (mxu dtype)
    x_ref:       [tk, Dip]  node-tile of input features           (mxu dtype)
    wt_ref:      [Dip, tn]  W^T column-tile                       (mxu dtype)
    b_ref:       [1, tn]    bias column-tile                      (f32)
    out_ref:     [Np, tn]   f32 output column slab, VMEM-resident across (k, i)
    support_ref: [tk, tn]   VMEM scratch holding x_k @ W^T_j + b  (mxu dtype)
    """
    k = pl.program_id(2)
    i = pl.program_id(3)
    tm = adj_ref.shape[0]

    # Linear "support" tile: computed once per (b, j, k), reused for every row
    # tile i (i is the innermost grid axis).
    @pl.when(i == 0)
    def _():
        s = jnp.dot(x_ref[...], wt_ref[...],
                    preferred_element_type=jnp.float32) + b_ref[...]
        support_ref[...] = s.astype(support_ref.dtype)

    contrib = jnp.dot(adj_ref[...], support_ref[...],
                      preferred_element_type=jnp.float32)

    rows = pl.ds(pl.multiple_of(i * tm, tm), tm)

    @pl.when(k == 0)
    def _():
        out_ref[rows, :] = contrib

    @pl.when(k > 0)
    def _():
        out_ref[rows, :] += contrib


def graph_convolution(x, adj, weight, bias, *, tm=256, tn=256, tk=256,
                      mxu_dtype=jnp.float32):
    """x: [B, N, Din], adj: [B, N, N], weight: [Dout, Din] (nn.Linear layout),
    bias: [Dout].  Returns adj @ (x @ weight.T + bias) -> [B, N, Dout] (f32)."""
    B, N, Din = x.shape
    Dout, Din_w = weight.shape
    assert Din_w == Din, (Din_w, Din)

    # Lane-dense padding (multiples of 128); tiles clamped so they divide the
    # padded dims exactly and never inflate padding beyond the 128 round-up.
    Np = _round_up(N, 128)
    Dop = _round_up(Dout, 128)
    Dip = _round_up(Din, 128)
    tm = _fit_tile(tm, Np)
    tk = _fit_tile(tk, Np)
    tn = _fit_tile(tn, Dop)

    # Host-side prep (no-ops when shapes already match).  adj/x/W^T feed the
    # MXU and are stored in mxu_dtype (bf16 halves their HBM traffic on
    # v6e/v7x); bias and the output stay f32.
    xp = _pad(x.astype(mxu_dtype), (B, Np, Dip))
    adjp = _pad(adj.astype(mxu_dtype), (B, Np, Np))
    wtp = _pad(weight.T.astype(mxu_dtype), (Dip, Dop))
    bp = _pad(bias.astype(jnp.float32).reshape(1, Dout), (1, Dop))

    grid = (B, Dop // tn, Np // tk, Np // tm)   # (b, j, k, i), i innermost

    # Rough VMEM footprint -> explicit scoped limit (capped for v7x's 64 MiB).
    mb = jnp.dtype(mxu_dtype).itemsize
    vmem_est = (2 * tm * tk * mb            # adj block (double-buffered)
                + 2 * tk * Dip * mb         # x block
                + 2 * Dip * tn * mb         # W^T block
                + 2 * tn * 4                # bias block
                + 2 * Np * tn * 4           # resident output column slab
                + tk * tn * mb)             # support scratch
    vmem_limit = int(min(max(vmem_est * 5 // 4 + (2 << 20), 32 << 20), 48 << 20))

    out = pl.pallas_call(
        _gcn_kernel,
        out_shape=jax.ShapeDtypeStruct((B, Np, Dop), jnp.float32),
        grid_spec=pltpu.PrefetchScalarGridSpec(
            num_scalar_prefetch=0,
            grid=grid,
            in_specs=[
                # adjacency row-tile x node-tile (batch squeezed)
                pl.BlockSpec((None, tm, tk), lambda b, j, k, i: (b, i, k)),
                # x node-tile, full (padded) input-feature dim; independent of
                # i -> only re-fetched when k changes
                pl.BlockSpec((None, tk, Dip), lambda b, j, k, i: (b, k, 0)),
                # W^T column-tile (only re-fetched when j changes)
                pl.BlockSpec((Dip, tn), lambda b, j, k, i: (0, j)),
                # bias column-tile
                pl.BlockSpec((1, tn), lambda b, j, k, i: (0, j)),
            ],
            # Full output column slab stays resident across the (k, i) sweep,
            # written back to HBM once per (b, j).
            out_specs=pl.BlockSpec((None, Np, tn), lambda b, j, k, i: (b, 0, j)),
            scratch_shapes=[pltpu.VMEM((tk, tn), mxu_dtype)],
        ),
        compiler_params=pltpu.CompilerParams(
            dimension_semantics=("parallel", "parallel",
                                 "arbitrary", "arbitrary"),
            vmem_limit_bytes=vmem_limit),
    )(adjp, xp, wtp, bp)

    return out[:, :N, :Dout]


if __name__ == "__main__":
    B, N, Din, Dout = 2, 16, 32, 32

    key = jax.random.PRNGKey(0)
    kx, ka, kw, kb = jax.random.split(key, 4)
    x = jax.random.normal(kx, (B, N, Din), jnp.float32)
    adj = jax.random.uniform(ka, (B, N, N), jnp.float32)
    bound = 1.0 / (Din ** 0.5)
    weight = jax.random.uniform(kw, (Dout, Din), jnp.float32, -bound, bound)
    bias = jax.random.uniform(kb, (Dout,), jnp.float32, -bound, bound)

    # Reference (same math as the PyTorch module).
    support_ref = jnp.einsum('bnd,od->bno', x, weight) + bias
    ref = jnp.einsum('bnm,bmo->bno', adj, support_ref)

    # Exact (f32 MXU) path — matches the PyTorch module numerics.
    fwd = jax.jit(graph_convolution)
    out = fwd(x, adj, weight, bias)
    jax.block_until_ready(out)
    assert out.shape == (B, N, Dout)
    err = float(jnp.max(jnp.abs(out - ref)))
    assert jnp.allclose(out, ref, atol=1e-3, rtol=1e-3), err

    # Fast bf16-MXU path (v6e/v7x) — same kernel, looser tolerance.
    fwd_bf16 = jax.jit(lambda *a: graph_convolution(*a, mxu_dtype=jnp.bfloat16))
    out_bf16 = fwd_bf16(x, adj, weight, bias)
    jax.block_until_ready(out_bf16)
    err_bf16 = float(jnp.max(jnp.abs(out_bf16 - ref)))
    assert jnp.allclose(out_bf16, ref, atol=1e-1, rtol=1e-1), err_bf16

    print("KERNEL_OK")
</pallas_src>

<mosaic_0001>
module attributes {stable_mosaic.version = 11 : i64} {
  func.func @_gcn_kernel(%arg0: i32, %arg1: i32, %arg2: i32, %arg3: i32, %arg4: memref<1x128x128xf32, #tpu.memory_space<vmem>>, %arg5: memref<1x128x128xf32, #tpu.memory_space<vmem>>, %arg6: memref<128x128xf32, #tpu.memory_space<vmem>>, %arg7: memref<1x128xf32, #tpu.memory_space<vmem>>, %arg8: memref<1x128x128xf32, #tpu.memory_space<vmem>>, %arg9: memref<128x128xf32, #tpu.memory_space<vmem>>) attributes {dimension_semantics = [#tpu.dimension_semantics<parallel>, #tpu.dimension_semantics<parallel>, #tpu.dimension_semantics<arbitrary>, #tpu.dimension_semantics<arbitrary>], iteration_bounds = array<i64: 2, 1, 1, 1>, scalar_prefetch = 0 : i64, scratch_operands = 1 : i64, tpu.core_type = #tpu.core_type<tc>, window_params = [{transform_indices = @transform_0, window_bounds = array<i64: 1, 128, 128>}, {transform_indices = @transform_1, window_bounds = array<i64: 1, 128, 128>}, {transform_indices = @transform_2, window_bounds = array<i64: 128, 128>}, {transform_indices = @transform_3, window_bounds = array<i64: 1, 128>}, {transform_indices = @transform_4, window_bounds = array<i64: 1, 128, 128>}]} {
    %c0_i32 = arith.constant 0 : i32
    %0 = arith.cmpi eq, %arg3, %c0_i32 : i32
    %1 = arith.extui %0 : i1 to i32
    %c0_i32_0 = arith.constant 0 : i32
    %2 = arith.cmpi ne, %1, %c0_i32_0 : i32
    scf.if %2 {
      %c0_9 = arith.constant 0 : index
      %c0_10 = arith.constant 0 : index
      %c0_11 = arith.constant 0 : index
      %15 = vector.load %arg5[%c0_9, %c0_10, %c0_11] : memref<1x128x128xf32, #tpu.memory_space<vmem>>, vector<1x128x128xf32>
      %16 = vector.shape_cast %15 : vector<1x128x128xf32> to vector<128x128xf32>
      %c0_12 = arith.constant 0 : index
      %c0_13 = arith.constant 0 : index
      %17 = vector.load %arg6[%c0_12, %c0_13] : memref<128x128xf32, #tpu.memory_space<vmem>>, vector<128x128xf32>
      %cst_14 = arith.constant dense<0.000000e+00> : vector<128x128xf32>
      %18 = tpu.matmul %16, %17, %cst_14 {dimension_numbers = #tpu.dot_dimension_numbers<[1], [0], [0], [1], [0, 0, 1, 1], [], []>} : vector<128x128xf32>, vector<128x128xf32>, vector<128x128xf32> -> vector<128x128xf32>
      %c0_15 = arith.constant 0 : index
      %c0_16 = arith.constant 0 : index
      %19 = vector.load %arg7[%c0_15, %c0_16] : memref<1x128xf32, #tpu.memory_space<vmem>>, vector<1x128xf32>
      %20 = vector.broadcast %19 : vector<1x128xf32> to vector<128x128xf32>
      %21 = arith.addf %18, %20 : vector<128x128xf32>
      %c0_17 = arith.constant 0 : index
      %c0_18 = arith.constant 0 : index
      %22 = vector.load %arg9[%c0_17, %c0_18] : memref<128x128xf32, #tpu.memory_space<vmem>>, vector<128x128xf32>
      tpu.vector_store %arg9[%c0_17, %c0_18], %21 {strides = array<i32>} : memref<128x128xf32, #tpu.memory_space<vmem>>, vector<128x128xf32>,
    } else {
    }
    %c0 = arith.constant 0 : index
    %c0_1 = arith.constant 0 : index
    %c0_2 = arith.constant 0 : index
    %3 = vector.load %arg4[%c0, %c0_1, %c0_2] : memref<1x128x128xf32, #tpu.memory_space<vmem>>, vector<1x128x128xf32>
    %4 = vector.shape_cast %3 : vector<1x128x128xf32> to vector<128x128xf32>
    %c0_3 = arith.constant 0 : index
    %c0_4 = arith.constant 0 : index
    %5 = vector.load %arg9[%c0_3, %c0_4] : memref<128x128xf32, #tpu.memory_space<vmem>>, vector<128x128xf32>
    %cst = arith.constant dense<0.000000e+00> : vector<128x128xf32>
    %6 = tpu.matmul %4, %5, %cst {dimension_numbers = #tpu.dot_dimension_numbers<[1], [0], [0], [1], [0, 0, 1, 1], [], []>} : vector<128x128xf32>, vector<128x128xf32>, vector<128x128xf32> -> vector<128x128xf32>
    %c128_i32 = arith.constant 128 : i32
    %7 = arith.muli %arg3, %c128_i32 : i32
    %8 = tpu.assume_multiple %7, 128 : i32
    %c0_i32_5 = arith.constant 0 : i32
    %9 = arith.cmpi eq, %arg2, %c0_i32_5 : i32
    %10 = arith.extui %9 : i1 to i32
    %c0_i32_6 = arith.constant 0 : i32
    %11 = arith.cmpi ne, %10, %c0_i32_6 : i32
    scf.if %11 {
      %c0_9 = arith.constant 0 : index
      %15 = arith.index_cast %8 : i32 to index
      %c0_10 = arith.constant 0 : index
      %16 = vector.load %arg8[%c0_9, %15, %c0_10] : memref<1x128x128xf32, #tpu.memory_space<vmem>>, vector<1x128x128xf32>
      %17 = vector.shape_cast %16 : vector<1x128x128xf32> to vector<128x128xf32>
      %18 = vector.shape_cast %6 : vector<128x128xf32> to vector<1x128x128xf32>
      tpu.vector_store %arg8[%c0_9, %15, %c0_10], %18 {strides = array<i32>} : memref<1x128x128xf32, #tpu.memory_space<vmem>>, vector<1x128x128xf32>,
    } else {
    }
    %c0_i32_7 = arith.constant 0 : i32
    %12 = arith.cmpi sgt, %arg2, %c0_i32_7 : i32
    %13 = arith.extui %12 : i1 to i32
    %c0_i32_8 = arith.constant 0 : i32
    %14 = arith.cmpi ne, %13, %c0_i32_8 : i32
    scf.if %14 {
      %c0_9 = arith.constant 0 : index
      %15 = arith.index_cast %8 : i32 to index
      %c0_10 = arith.constant 0 : index
      %16 = vector.load %arg8[%c0_9, %15, %c0_10] : memref<1x128x128xf32, #tpu.memory_space<vmem>>, vector<1x128x128xf32>
      %17 = vector.shape_cast %16 : vector<1x128x128xf32> to vector<128x128xf32>
      %18 = arith.addf %17, %6 : vector<128x128xf32>
      %c0_11 = arith.constant 0 : index
      %19 = arith.index_cast %8 : i32 to index
      %c0_12 = arith.constant 0 : index
      %20 = vector.load %arg8[%c0_11, %19, %c0_12] : memref<1x128x128xf32, #tpu.memory_space<vmem>>, vector<1x128x128xf32>
      %21 = vector.shape_cast %20 : vector<1x128x128xf32> to vector<128x128xf32>
      %22 = vector.shape_cast %18 : vector<128x128xf32> to vector<1x128x128xf32>
      tpu.vector_store %arg8[%c0_11, %19, %c0_12], %22 {strides = array<i32>} : memref<1x128x128xf32, #tpu.memory_space<vmem>>, vector<1x128x128xf32>,
    } else {
    }
    return
  }
  func.func @transform_0(%arg0: i32, %arg1: i32, %arg2: i32, %arg3: i32) -> (i32, i32, i32) {
    %c0_i32 = arith.constant 0 : i32
    return %arg0, %arg3, %arg2 : i32, i32, i32
  }
  func.func @transform_1(%arg0: i32, %arg1: i32, %arg2: i32, %arg3: i32) -> (i32, i32, i32) {
    %c0_i32 = arith.constant 0 : i32
    %c0_i32_0 = arith.constant 0 : i32
    return %arg0, %arg2, %c0_i32 : i32, i32, i32
  }
  func.func @transform_2(%arg0: i32, %arg1: i32, %arg2: i32, %arg3: i32) -> (i32, i32) {
    %c0_i32 = arith.constant 0 : i32
    %c0_i32_0 = arith.constant 0 : i32
    return %c0_i32, %arg1 : i32, i32
  }
  func.func @transform_3(%arg0: i32, %arg1: i32, %arg2: i32, %arg3: i32) -> (i32, i32) {
    %c0_i32 = arith.constant 0 : i32
    %c0_i32_0 = arith.constant 0 : i32
    return %c0_i32, %arg1 : i32, i32
  }
  func.func @transform_4(%arg0: i32, %arg1: i32, %arg2: i32, %arg3: i32) -> (i32, i32, i32) {
    %c0_i32 = arith.constant 0 : i32
    %c0_i32_0 = arith.constant 0 : i32
    return %arg0, %c0_i32, %arg1 : i32, i32, i32
  }
}

</mosaic_0001>

<bundles_post_ra>
// kernel: graph_convolution.1
= control target key start
LH: loop header
LB: loop body
LE: loop exit
PB: predicated region body
PF: predicated region fallthrough
CT: control target
= control target key end

     0   :  { %s1256_s15 = smov 0   ;;  %s1258_s16 = smov 0   ;;  %s1402_s0 = inlined_call_operand.vmem [shape: f32[2,128,128], index: 0, kind: input, shape index: {}]   ;;  %s1403_s1 = inlined_call_operand.vmem [shape: f32[2,128,128], index: 1, kind: input, shape index: {}]   ;;  %s1404_s2 = inlined_call_operand.vmem [shape: f32[128,128], index: 2, kind: input, shape index: {}]   ;;  %s1405_s3 = inlined_call_operand.vmem [shape: f32[1,128], index: 3, kind: input, shape index: {}]   ;;  %s1406_s4 = inlined_call_operand.vmem [shape: f32[2,128,128], index: 4, kind: output, shape index: {}]  }
   0x1   :  { %s1260_s17 = smov 0  }
   0x2 LB: > { %s40_s18 = sadd.s32 1, %s1225_s16  ;;  %p930_p0 = scmp.ge.s32.totalorder %s1229_s17, 1  ;;  %s1229_s17 = sphi %s1260_s17, %s14_s17   ;;  %s1225_s16 = sphi %s1258_s16, %s1408_s16   ;;  %s1221_s15 = sphi %s1256_s15, %s1407_s15  }
   0x3   : > { %p42_p1 = scmp.ge.s32.totalorder %s40_s18, 2  ;;  %p236_p2 = scmp.lt.s32.totalorder %s1229_s17, 3 }
   0x5   : > { %s1410_s18 = smov (%p42_p1, %s40_s18), 0  ;;  %p237_p3 = pnand %p930_p0, %p236_p2 }
   0x6   : > { %v346_v0 = vld [vmem:[%s1404_s2] sm:$0xff] (!%p237_p3)  ;;  %v347_v1 = vld [vmem:[%s1404_s2 + $0x8] sm:$0xff] (!%p237_p3)  ;;  %v348_v2 = vld [vmem:[%s1404_s2 + $0x10] sm:$0xff] (!%p237_p3)  ;;  %p289_p4 = scmp.lt.s32.totalorder (!%p237_p3), %s1221_s15, 1 }
   0x7   : > { %240 = sbr.rel (%p237_p3) target bundleno = 532 (0x214), region = 36  ;;  %v1119_v3 = vpack.c.bf16 (!%p237_p3), %v347_v1, %v346_v0  ;;  %v349_v4 = vld [vmem:[%s1404_s2 + $0x18] sm:$0xff] (!%p237_p3)  ;;  %v350_v6 = vld [vmem:[%s1404_s2 + $0x20] sm:$0xff] (!%p237_p3)  ;;  %v351_v7 = vld [vmem:[%s1404_s2 + $0x28] sm:$0xff] (!%p237_p3) }
   0x8   : > { %v1123_v5 = vpack.c.bf16 (!%p237_p3), %v349_v4, %v348_v2  ;;  %v1127_v8 = vpack.c.bf16 (!%p237_p3), %v351_v7, %v350_v6  ;;  %v352_v9 = vld [vmem:[%s1404_s2 + $0x30] sm:$0xff] (!%p237_p3)  ;;  %v353_v10 = vld [vmem:[%s1404_s2 + $0x38] sm:$0xff] (!%p237_p3)  ;;  %v354_v13 = vld [vmem:[%s1404_s2 + $0x40] sm:$0xff] (!%p237_p3) }
   0x9   : > { %1120 = vmatprep.subr.bf16.mxu0 (!%p237_p3), %v1119_v3  ;;  %v1131_v12 = vpack.c.bf16 (!%p237_p3), %v353_v10, %v352_v9  ;;  %v355_v14 = vld [vmem:[%s1404_s2 + $0x48] sm:$0xff] (!%p237_p3)  ;;  %v356_v16 = vld [vmem:[%s1404_s2 + $0x50] sm:$0xff] (!%p237_p3)  ;;  %v357_v17 = vld [vmem:[%s1404_s2 + $0x58] sm:$0xff] (!%p237_p3) }
   0xa   : > { %1122 = vmatpush3.bf16.msra.mxu0 (!%p237_p3), %v1119_v3  ;;  %v1135_v15 = vpack.c.bf16 (!%p237_p3), %v355_v14, %v354_v13  ;;  %v1139_v18 = vpack.c.bf16 (!%p237_p3), %v357_v17, %v356_v16  ;;  %v358_v19 = vld [vmem:[%s1404_s2 + $0x60] sm:$0xff] (!%p237_p3)  ;;  %v359_v20 = vld [vmem:[%s1404_s2 + $0x68] sm:$0xff] (!%p237_p3)  ;;  %v360_v22 = vld [vmem:[%s1404_s2 + $0x70] sm:$0xff] (!%p237_p3) }
   0xb   : > { %1124 = vmatprep.subr.bf16.mxu0 (!%p237_p3), %v1123_v5  ;;  %v1143_v21 = vpack.c.bf16 (!%p237_p3), %v359_v20, %v358_v19  ;;  %v361_v23 = vld [vmem:[%s1404_s2 + $0x78] sm:$0xff] (!%p237_p3)  ;;  %v937_v41 = vld [vmem:[%s1405_s3] ss:$0 sm:$0xff] (!%p237_p3) }
   0xc   : > { %v1147_v24 = vpack.c.bf16 (!%p237_p3), %v361_v23, %v360_v22 }
   0xe   : > { %s1412_s15 = smov (!%p289_p4, %s1221_s15), 1  ;;  %1126 = vmatpush3.bf16.msra.mxu0 %v1123_v5 }
   0xf   : > { %s1292_s5 = sshll.u32 %s1412_s15, 7  ;;  %1128 = vmatprep.subr.bf16.mxu0 %v1127_v8 }
  0x10   : > { %s1298_s8 = scalar_lea.vmem %s1403_s1, %s1292_s5  ;;  %s1350_s10 = scalar_lea.vmem %s1402_s0, %s1292_s5 }
  0x11   : > { %v330_v11 = vld [vmem:[%s1298_s8] sm:$0xff]  ;;  %v331_v25 = vld [vmem:[%s1298_s8 + $0x8] sm:$0xff]  ;;  %v332_v26 = vld [vmem:[%s1298_s8 + $0x10] sm:$0xff]  ;;  %s1375_s14 = scalar_lea.vmem %s1406_s4, %s1292_s5 }
  0x12   : > { %1039 = vmatprep.mubr.f32.mxu0 %v330_v11  ;;  %1130 = vmatpush3.bf16.msra.mxu0 %v1127_v8  ;;  %v333_v27 = vld [vmem:[%s1298_s8 + $0x18] sm:$0xff]  ;;  %v334_v28 = vld [vmem:[%s1298_s8 + $0x20] sm:$0xff]  ;;  %v335_v29 = vld [vmem:[%s1298_s8 + $0x28] sm:$0xff] }
  0x13   : > { %1132 = vmatprep.subr.bf16.mxu0 %v1131_v12  ;;  %v336_v30 = vld [vmem:[%s1298_s8 + $0x30] sm:$0xff]  ;;  %v337_v31 = vld [vmem:[%s1298_s8 + $0x38] sm:$0xff]  ;;  %v338_v32 = vld [vmem:[%s1298_s8 + $0x40] sm:$0xff] }
  0x14   : > { %v339_v33 = vld [vmem:[%s1298_s8 + $0x48] sm:$0xff]  ;;  %v340_v34 = vld [vmem:[%s1298_s8 + $0x50] sm:$0xff]  ;;  %v341_v35 = vld [vmem:[%s1298_s8 + $0x58] sm:$0xff] }
  0x15   : > { %v342_v36 = vld [vmem:[%s1298_s8 + $0x60] sm:$0xff]  ;;  %v343_v37 = vld [vmem:[%s1298_s8 + $0x68] sm:$0xff]  ;;  %v344_v38 = vld [vmem:[%s1298_s8 + $0x70] sm:$0xff] }
  0x16   : > { %1134 = vmatpush3.bf16.msra.mxu0 %v1131_v12  ;;  %v345_v39 = vld [vmem:[%s1298_s8 + $0x78] sm:$0xff]  ;;  %v530_v40 = vld [vmem:[%s1350_s10] sm:$0xff]  ;;  %v532_v19 = vld [vmem:[%s1350_s10 + $0x10] sm:$0xff] }
  0x17   : > { %1136 = vmatprep.subr.bf16.mxu0 %v1135_v15  ;;  %1095 = vmatprep.mubr.f32.mxu1 %v530_v40  ;;  %v533_v20 = vld [vmem:[%s1350_s10 + $0x18] sm:$0xff]  ;;  %v535_v22 = vld [vmem:[%s1350_s10 + $0x28] sm:$0xff]  ;;  %v536_v23 = vld [vmem:[%s1350_s10 + $0x30] sm:$0xff] }
  0x1a   : > { %1138 = vmatpush3.bf16.msra.mxu0 %v1135_v15 }
  0x1b   : > { %1140 = vmatprep.subr.bf16.mxu0 %v1139_v18 }
  0x1e   : > { %1142 = vmatpush3.bf16.msra.mxu0 %v1139_v18  ;;  %v531_v18 = vld [vmem:[%s1350_s10 + $0x8] sm:$0xff] }
  0x1f   : > { %1144 = vmatprep.subr.bf16.mxu0 %v1143_v21 }
  0x22   : > { %1146 = vmatpush3.bf16.msra.mxu0 %v1143_v21  ;;  %v534_v21 = vld [vmem:[%s1350_s10 + $0x20] sm:$0xff] }
  0x23   : > { %1148 = vmatprep.subr.bf16.mxu0 %v1147_v24 }
  0x26   : > { %1150 = vmatpush3.bf16.msra.mxu0 %v1147_v24  ;;  %v537_v24 = vld [vmem:[%s1350_s10 + $0x38] sm:$0xff] }
  0x29   : > { %1040 = vmatmul.mubr.f32.vlgmr.msra.gmra.mrb[0].mxu0 %v331_v25  ;;  %v538_v25 = vld [vmem:[%s1350_s10 + $0x40] sm:$0xff] }
  0x2a   : > { %1042 = vmatprep.mubr.f32.mxu0 %v332_v26  ;;  %v539_v26 = vld [vmem:[%s1350_s10 + $0x48] sm:$0xff] }
  0x2d   : > { %1043 = vmatmul.mubr.f32.gmra.mrb[2].mxu0 %v333_v27  ;;  %v540_v27 = vld [vmem:[%s1350_s10 + $0x50] sm:$0xff] }
  0x2e   : > { %1045 = vmatprep.mubr.f32.mxu0 %v334_v28  ;;  %v541_v28 = vld [vmem:[%s1350_s10 + $0x58] sm:$0xff] }
  0x31   : > { %1046 = vmatmul.mubr.f32.gmra.mrb[4].mxu0 %v335_v29  ;;  %v542_v29 = vld [vmem:[%s1350_s10 + $0x60] sm:$0xff] }
  0x32   : > { %1048 = vmatprep.mubr.f32.mxu0 %v336_v30  ;;  %v543_v30 = vld [vmem:[%s1350_s10 + $0x68] sm:$0xff] }
  0x35   : > { %1049 = vmatmul.mubr.f32.gmra.mrb[6].mxu0 %v337_v31  ;;  %v544_v31 = vld [vmem:[%s1350_s10 + $0x70] sm:$0xff] }
  0x36   : > { %1051 = vmatprep.mubr.f32.mxu0 %v338_v32  ;;  %v545_v32 = vld [vmem:[%s1350_s10 + $0x78] sm:$0xff] }
  0x39   : > { %1052 = vmatmul.mubr.f32.gmra.mrb[8].mxu0 %v339_v33 }
  0x3a   : > { %1054 = vmatprep.mubr.f32.mxu0 %v340_v34 }
  0x3d   : > { %1055 = vmatmul.mubr.f32.gmra.mrb[10].mxu0 %v341_v35 }
  0x3e   : > { %1057 = vmatprep.mubr.f32.mxu0 %v342_v36 }
  0x41   : > { %1058 = vmatmul.mubr.f32.gmra.mrb[12].mxu0 %v343_v37 }
  0x42   : > { %1060 = vmatprep.mubr.f32.mxu0 %v344_v38 }
  0x45   : > { %1061 = vmatmul.mubr.f32.gmra.mrb[14].mxu0 %v345_v39 }
  0xfc   : > { %v1041_v42 = vpop.f32.mrb[0].mxu0 }
  0xfd   : > { %v441_v43 = vadd.f32 %v1041_v42, %v937_v41  ;;  %v435_v44 = vpop.f32.mrb[1].mxu0 }
  0xfe   : > { %v436_v45 = vadd.f32 %v937_v41, %v435_v44 }
 0x100   : > { %v1044_v46 = vpop.f32.mrb[2].mxu0  ;;  %v1151_v47 = vpack.c.bf16 %v441_v43, %v436_v45 }
 0x101   : > { %v451_v48 = vadd.f32 %v1044_v46, %v937_v41  ;;  %v445_v49 = vpop.f32.mrb[3].mxu0 }
 0x102   : > { %v446_v50 = vadd.f32 %v937_v41, %v445_v49  ;;  %1152 = vmatprep.subr.bf16.mxu1 %v1151_v47 }
 0x103   : > { %1154 = vmatpush3.bf16.msra.mxu1 %v1151_v47 }
 0x104   : > { %v1155_v51 = vpack.c.bf16 %v451_v48, %v446_v50  ;;  %v1047_v52 = vpop.f32.mrb[4].mxu0 }
 0x105   : > { %v461_v53 = vadd.f32 %v1047_v52, %v937_v41  ;;  %v455_v54 = vpop.f32.mrb[5].mxu0 }
 0x106   : > { %v456_v55 = vadd.f32 %v937_v41, %v455_v54  ;;  %1156 = vmatprep.subr.bf16.mxu1 %v1155_v51 }
 0x107   : > { %1158 = vmatpush3.bf16.msra.mxu1 %v1155_v51 }
 0x108   : > { %v1159_v56 = vpack.c.bf16 %v461_v53, %v456_v55  ;;  %v1050_v57 = vpop.f32.mrb[6].mxu0 }
 0x109   : > { %v471_v58 = vadd.f32 %v1050_v57, %v937_v41  ;;  %v465_v59 = vpop.f32.mrb[7].mxu0 }
 0x10a   : > { %v466_v60 = vadd.f32 %v937_v41, %v465_v59  ;;  %1160 = vmatprep.subr.bf16.mxu1 %v1159_v56 }
 0x10b   : > { %1162 = vmatpush3.bf16.msra.mxu1 %v1159_v56 }
 0x10c   : > { %v1163_v61 = vpack.c.bf16 %v471_v58, %v466_v60  ;;  %v1053_v62 = vpop.f32.mrb[8].mxu0 }
 0x10d   : > { %v481_v63 = vadd.f32 %v1053_v62, %v937_v41  ;;  %v475_v0 = vpop.f32.mrb[9].mxu0 }
 0x10e   : > { %v476_v1 = vadd.f32 %v937_v41, %v475_v0  ;;  %1164 = vmatprep.subr.bf16.mxu1 %v1163_v61 }
 0x10f   : > { %1166 = vmatpush3.bf16.msra.mxu1 %v1163_v61 }
 0x110   : > { %v1167_v2 = vpack.c.bf16 %v481_v63, %v476_v1  ;;  %v1056_v3 = vpop.f32.mrb[10].mxu0 }
 0x111   : > { %v491_v4 = vadd.f32 %v1056_v3, %v937_v41  ;;  %v485_v5 = vpop.f32.mrb[11].mxu0 }
 0x112   : > { %v486_v6 = vadd.f32 %v937_v41, %v485_v5  ;;  %1168 = vmatprep.subr.bf16.mxu1 %v1167_v2 }
 0x113   : > { %1170 = vmatpush3.bf16.msra.mxu1 %v1167_v2 }
 0x114   : > { %v1171_v7 = vpack.c.bf16 %v491_v4, %v486_v6  ;;  %v1059_v8 = vpop.f32.mrb[12].mxu0 }
 0x115   : > { %v501_v9 = vadd.f32 %v1059_v8, %v937_v41  ;;  %v495_v10 = vpop.f32.mrb[13].mxu0 }
 0x116   : > { %v496_v11 = vadd.f32 %v937_v41, %v495_v10  ;;  %1172 = vmatprep.subr.bf16.mxu1 %v1171_v7 }
 0x117   : > { %1174 = vmatpush3.bf16.msra.mxu1 %v1171_v7 }
 0x118   : > { %v1175_v12 = vpack.c.bf16 %v501_v9, %v496_v11  ;;  %v1062_v13 = vpop.f32.mrb[14].mxu0 }
 0x119   : > { %v511_v14 = vadd.f32 %v1062_v13, %v937_v41  ;;  %v505_v15 = vpop.f32.mrb[15].mxu0 }
 0x11a   : > { %v506_v16 = vadd.f32 %v937_v41, %v505_v15  ;;  %1176 = vmatprep.subr.bf16.mxu1 %v1175_v12 }
 0x11b   : > { %1178 = vmatpush3.bf16.msra.mxu1 %v1175_v12 }
 0x11c   : > { %v1179_v17 = vpack.c.bf16 %v511_v14, %v506_v16 }
 0x11e   : > { %1180 = vmatprep.subr.bf16.mxu1 %v1179_v17 }
 0x11f   : > { %1182 = vmatpush3.bf16.msra.mxu1 %v1179_v17 }
 0x122   : > { %1096 = vmatmul.mubr.f32.vlgmr.msra.gmra.mrb[0].mxu1 %v531_v18 }
 0x123   : > { %1098 = vmatprep.mubr.f32.mxu1 %v532_v19 }
 0x126   : > { %1099 = vmatmul.mubr.f32.gmra.mrb[2].mxu1 %v533_v20 }
 0x127   : > { %1101 = vmatprep.mubr.f32.mxu1 %v534_v21 }
 0x12a   : > { %1102 = vmatmul.mubr.f32.gmra.mrb[4].mxu1 %v535_v22 }
 0x12b   : > { %1104 = vmatprep.mubr.f32.mxu1 %v536_v23 }
 0x12e   : > { %1105 = vmatmul.mubr.f32.gmra.mrb[6].mxu1 %v537_v24 }
 0x12f   : > { %1107 = vmatprep.mubr.f32.mxu1 %v538_v25 }
 0x132   : > { %1108 = vmatmul.mubr.f32.gmra.mrb[8].mxu1 %v539_v26 }
 0x133   : > { %1110 = vmatprep.mubr.f32.mxu1 %v540_v27 }
 0x136   : > { %1111 = vmatmul.mubr.f32.gmra.mrb[10].mxu1 %v541_v28 }
 0x137   : > { %1113 = vmatprep.mubr.f32.mxu1 %v542_v29 }
 0x13a   : > { %1114 = vmatmul.mubr.f32.gmra.mrb[12].mxu1 %v543_v30 }
 0x13b   : > { %1116 = vmatprep.mubr.f32.mxu1 %v544_v31 }
 0x13e   : > { %1117 = vmatmul.mubr.f32.gmra.mrb[14].mxu1 %v545_v32 }
 0x1f5   : > { %v1097_v33 = vpop.f32.mrb[0].mxu1 }
 0x1f6   : > { %714 = vst [vmem:[%s1375_s14 + $0x8] sm:$0xff] %v1097_v33  ;;  %v628_v34 = vpop.f32.mrb[1].mxu1 }
 0x1f7   : > { %713 = vst [vmem:[%s1375_s14] sm:$0xff] %v628_v34 }
 0x1f9   : > { %v1100_v35 = vpop.f32.mrb[2].mxu1 }
 0x1fa   : > { %716 = vst [vmem:[%s1375_s14 + $0x18] sm:$0xff] %v1100_v35  ;;  %v638_v36 = vpop.f32.mrb[3].mxu1 }
 0x1fb   : > { %715 = vst [vmem:[%s1375_s14 + $0x10] sm:$0xff] %v638_v36 }
 0x1fd   : > { %v1103_v37 = vpop.f32.mrb[4].mxu1 }
 0x1fe   : > { %718 = vst [vmem:[%s1375_s14 + $0x28] sm:$0xff] %v1103_v37  ;;  %v648_v38 = vpop.f32.mrb[5].mxu1 }
 0x1ff   : > { %717 = vst [vmem:[%s1375_s14 + $0x20] sm:$0xff] %v648_v38 }
 0x201   : > { %v1106_v39 = vpop.f32.mrb[6].mxu1 }
 0x202   : > { %720 = vst [vmem:[%s1375_s14 + $0x38] sm:$0xff] %v1106_v39  ;;  %v658_v40 = vpop.f32.mrb[7].mxu1 }
 0x203   : > { %719 = vst [vmem:[%s1375_s14 + $0x30] sm:$0xff] %v658_v40 }
 0x205   : > { %v1109_v41 = vpop.f32.mrb[8].mxu1 }
 0x206   : > { %722 = vst [vmem:[%s1375_s14 + $0x48] sm:$0xff] %v1109_v41  ;;  %v668_v42 = vpop.f32.mrb[9].mxu1 }
 0x207   : > { %721 = vst [vmem:[%s1375_s14 + $0x40] sm:$0xff] %v668_v42 }
 0x209   : > { %v1112_v43 = vpop.f32.mrb[10].mxu1 }
 0x20a   : > { %724 = vst [vmem:[%s1375_s14 + $0x58] sm:$0xff] %v1112_v43  ;;  %v678_v44 = vpop.f32.mrb[11].mxu1 }
 0x20b   : > { %723 = vst [vmem:[%s1375_s14 + $0x50] sm:$0xff] %v678_v44 }
 0x20d   : > { %v1115_v45 = vpop.f32.mrb[12].mxu1 }
 0x20e   : > { %726 = vst [vmem:[%s1375_s14 + $0x68] sm:$0xff] %v1115_v45  ;;  %v688_v46 = vpop.f32.mrb[13].mxu1 }
 0x20f   : > { %725 = vst [vmem:[%s1375_s14 + $0x60] sm:$0xff] %v688_v46 }
 0x211   : > { %v1118_v47 = vpop.f32.mrb[14].mxu1 }
 0x212   : > { %728 = vst [vmem:[%s1375_s14 + $0x78] sm:$0xff] %v1118_v47  ;;  %v698_v48 = vpop.f32.mrb[15].mxu1 }
 0x213   : > { %727 = vst [vmem:[%s1375_s14 + $0x70] sm:$0xff] %v698_v48 }
 0x214 PF: > { %s14_s17 = sadd.s32 1, %s1229_s17   ;;  %s1407_s15 = smov %s1225_s16 }
 0x215   : > { %p11_p5 = scmp.ge.s32.totalorder %s14_s17, 4   ;;  %s1408_s16 = smov %s1410_s18 }
 0x217   :  { %13 = sbr.rel (!%p11_p5) target bundleno = 2 (0x2), region = 89 }

</bundles_post_ra>
